<compile_context>
chip_gen: v7x
topology: tpu7x:2x2x1
jax: 0.10.0
libtpu: 0.0.40
codegen_flags: <defaults>
</compile_context>

<pallas_src>
import jax
import jax.numpy as jnp
from jax import lax
from jax.experimental import pallas as pl
from jax.experimental.pallas import tpu as pltpu

OUT_CLASSES = 3
PAD_CLASSES = 8           # classes padded to one sublane tile
NEG_BIAS = -1e30          # padding bias -> exp underflows to exactly 0.0
LANE = 128


def football_kernel(x_ref, w1_ref, b1_ref, w2_ref, b2_ref, w3t_ref, b3t_ref, o_ref):
    # fc1 + ReLU (MXU matmul, f32 accumulation regardless of input dtype)
    h1 = jnp.dot(x_ref[...], w1_ref[...], preferred_element_type=jnp.float32)
    h1 = jnp.maximum(h1 + b1_ref[...], 0.0)

    # fc2 + ReLU
    h2 = jnp.dot(h1, w2_ref[...], preferred_element_type=jnp.float32)
    h2 = jnp.maximum(h2 + b2_ref[...], 0.0)

    # fc3 directly in class-major (classes, batch) layout:
    #   logits_t[c, b] = sum_k w3t[c, k] * h2[b, k]     (A @ B^T, MXU-native)
    logits_t = lax.dot_general(
        w3t_ref[...], h2,
        dimension_numbers=(((1,), (1,)), ((), ())),
        preferred_element_type=jnp.float32)              # (8, tb)
    logits_t = logits_t + b3t_ref[...]                    # (8, tb) + (8, 1)

    # Numerically stable softmax along the class (sublane) axis. Padded
    # classes carry zero weights and -1e30 bias -> exp == 0 exactly, so the
    # normalization is effectively over the 3 real classes.
    m = jnp.max(logits_t, axis=0, keepdims=True)          # (1, tb)
    e = jnp.exp(logits_t - m)                             # (8, tb)
    denom = jnp.sum(e, axis=0, keepdims=True)             # (1, tb)
    r = pl.reciprocal(denom, approx=True)                 # EUP vrcp (free slot)
    r = r * (2.0 - denom * r)                             # Newton -> ~f32 accuracy
    o_ref[...] = (e * r).astype(o_ref.dtype)


def _round_up(n, m):
    return ((n + m - 1) // m) * m


def football_model(x, params, *, block_rows=8192, return_class_major=False):
    """Forward pass. x: (B, input_dim) f32 (or caller-provided bf16);
    params from init_params(). Returns (B, 3) softmax probabilities
    (or the raw class-major (3, B) slab if return_class_major=True)."""
    B, input_dim = x.shape
    w1, b1 = params["w1"], params["b1"]
    w2, b2 = params["w2"], params["b2"]
    w3, b3 = params["w3"], params["b3"]

    # Use bf16 on fc1 only if the caller already hands us bf16 activations;
    # never cast-and-copy x here (that would add a full HBM pass over x).
    if x.dtype == jnp.bfloat16:
        w1 = w1.astype(jnp.bfloat16)

    # Class-major padded fc3 params for the transposed output slab.
    w3t = jnp.zeros((PAD_CLASSES, w3.shape[0]), jnp.float32)
    w3t = w3t.at[:OUT_CLASSES, :].set(w3.T)
    b3t = jnp.full((PAD_CLASSES, 1), NEG_BIAS, jnp.float32)
    b3t = b3t.at[:OUT_CLASSES, 0].set(b3.reshape(-1))

    # Batch tile selection (batch is the output lane axis):
    #  * B <= 128: single full-array block (always legal).
    #  * else: multiple of 128 lanes, aim for >= 2 grid steps (v7x megacore),
    #    cap so 2x double-buffered x tiles stay ~<= 16 MiB of scoped VMEM.
    # No wrapper-side padding: Pallas masks the partial trailing block.
    if B <= LANE:
        tb = B
    else:
        x_bytes_per_row = input_dim * x.dtype.itemsize
        cap = max(LANE, ((8 * 1024 * 1024) // x_bytes_per_row) // LANE * LANE)
        tb = min(_round_up(block_rows, LANE),
                 _round_up(pl.cdiv(B, 2), LANE),
                 cap)
    grid = (pl.cdiv(B, tb),)

    # Weights/biases: full blocks with a constant index_map -> VMEM-resident,
    # not re-DMA'd per grid step.
    def resident(a):
        return pl.BlockSpec(a.shape, lambda i: (0, 0))

    out = pl.pallas_call(
        football_kernel,
        out_shape=jax.ShapeDtypeStruct((PAD_CLASSES, B), jnp.float32),
        grid=grid,
        in_specs=[
            pl.BlockSpec((tb, input_dim), lambda i: (i, 0)),   # x: batch-tiled
            resident(w1), resident(b1),
            resident(w2), resident(b2),
            resident(w3t), resident(b3t),
        ],
        out_specs=pl.BlockSpec((PAD_CLASSES, tb), lambda i: (0, i)),
        compiler_params=pltpu.CompilerParams(
            dimension_semantics=("parallel",),    # v7x: shard batch across 2 TCs
            vmem_limit_bytes=32 * 1024 * 1024,
        ),
    )(x, w1, b1, w2, b2, w3t, b3t)

    if return_class_major:
        return out[:OUT_CLASSES, :]               # (3, B), lane-dense slab
    return out[:OUT_CLASSES, :].T                 # (B, 3), PyTorch layout


def init_params(key, input_dim):
    """Deterministic init mimicking nn.Linear's uniform(-1/sqrt(fan_in), +)."""
    def linear(k, fan_in, fan_out):
        kw, kb = jax.random.split(k)
        bound = 1.0 / jnp.sqrt(fan_in)
        w = jax.random.uniform(kw, (fan_in, fan_out), jnp.float32, -bound, bound)
        b = jax.random.uniform(kb, (1, fan_out), jnp.float32, -bound, bound)
        return w, b

    k1, k2, k3 = jax.random.split(key, 3)
    w1, b1 = linear(k1, input_dim, 64)
    w2, b2 = linear(k2, 64, 32)
    w3, b3 = linear(k3, 32, 3)
    return dict(w1=w1, b1=b1, w2=w2, b2=b2, w3=w3, b3=b3)


def reference(x, p):
    xf = x.astype(jnp.float32)
    h1 = jnp.maximum(xf @ p["w1"] + p["b1"], 0.0)
    h2 = jnp.maximum(h1 @ p["w2"] + p["b2"], 0.0)
    logits = h2 @ p["w3"] + p["b3"]
    return jax.nn.softmax(logits, axis=1)


if __name__ == "__main__":
    key = jax.random.PRNGKey(0)
    kx, kp = jax.random.split(key)

    batch, input_dim = 8, 32
    x = jax.random.normal(kx, (batch, input_dim), jnp.float32)
    params = init_params(kp, input_dim)

    # Small-shape correctness run (single full-array block).
    out = jax.block_until_ready(football_model(x, params))
    ref = reference(x, params)
    assert out.shape == (batch, OUT_CLASSES)
    assert jnp.allclose(out, ref, atol=1e-5, rtol=1e-5)
    assert jnp.allclose(jnp.sum(out, axis=1), 1.0, atol=1e-5)

    # Multi-block pipelined path with a non-divisible batch: the partial
    # trailing block is handled by Pallas' masked tail write (no jnp.pad).
    x2 = jax.random.normal(jax.random.PRNGKey(1), (300, input_dim), jnp.float32)
    out2 = jax.block_until_ready(football_model(x2, params, block_rows=128))
    ref2 = reference(x2, params)
    assert out2.shape == (300, OUT_CLASSES)
    assert jnp.allclose(out2, ref2, atol=1e-5, rtol=1e-5)
    assert jnp.allclose(jnp.sum(out2, axis=1), 1.0, atol=1e-5)

    # Caller-provided bf16 activations (no wrapper-side cast/copy); fc1 runs
    # bf16 on the MXU, all post-matmul math stays f32.
    x2_bf16 = x2.astype(jnp.bfloat16)
    out3 = jax.block_until_ready(football_model(x2_bf16, params, block_rows=128))
    assert out3.shape == (300, OUT_CLASSES)
    assert jnp.allclose(out3, ref2, atol=5e-2, rtol=0)
    assert jnp.allclose(jnp.sum(out3, axis=1), 1.0, atol=1e-4)

    # Class-major fast-path output (skips the wrapper transpose entirely).
    out4 = jax.block_until_ready(
        football_model(x2, params, block_rows=128, return_class_major=True))
    assert out4.shape == (OUT_CLASSES, 300)
    assert jnp.allclose(out4.T, ref2, atol=1e-5, rtol=1e-5)

    print("KERNEL_OK")
</pallas_src>

<mosaic_0001>
module attributes {stable_mosaic.version = 11 : i64} {
  func.func @football_kernel(%arg0: i32, %arg1: memref<8x32xf32, #tpu.memory_space<vmem>>, %arg2: memref<32x64xf32, #tpu.memory_space<vmem>>, %arg3: memref<1x64xf32, #tpu.memory_space<vmem>>, %arg4: memref<64x32xf32, #tpu.memory_space<vmem>>, %arg5: memref<1x32xf32, #tpu.memory_space<vmem>>, %arg6: memref<8x32xf32, #tpu.memory_space<vmem>>, %arg7: memref<8x1xf32, #tpu.memory_space<vmem>>, %arg8: memref<8x8xf32, #tpu.memory_space<vmem>>) attributes {dimension_semantics = [#tpu.dimension_semantics<parallel>], iteration_bounds = array<i64: 1>, scalar_prefetch = 0 : i64, scratch_operands = 0 : i64, tpu.core_type = #tpu.core_type<tc>, window_params = [{transform_indices = @transform_0, window_bounds = array<i64: 8, 32>}, {pipeline_mode = #tpu.pipeline_mode<synchronous>, transform_indices = @transform_1, window_bounds = array<i64: 32, 64>}, {pipeline_mode = #tpu.pipeline_mode<synchronous>, transform_indices = @transform_2, window_bounds = array<i64: 1, 64>}, {pipeline_mode = #tpu.pipeline_mode<synchronous>, transform_indices = @transform_3, window_bounds = array<i64: 64, 32>}, {pipeline_mode = #tpu.pipeline_mode<synchronous>, transform_indices = @transform_4, window_bounds = array<i64: 1, 32>}, {pipeline_mode = #tpu.pipeline_mode<synchronous>, transform_indices = @transform_5, window_bounds = array<i64: 8, 32>}, {pipeline_mode = #tpu.pipeline_mode<synchronous>, transform_indices = @transform_6, window_bounds = array<i64: 8, 1>}, {transform_indices = @transform_7, window_bounds = array<i64: 8, 8>}]} {
    %c0 = arith.constant 0 : index
    %c0_0 = arith.constant 0 : index
    %0 = vector.load %arg1[%c0, %c0_0] : memref<8x32xf32, #tpu.memory_space<vmem>>, vector<8x32xf32>
    %c0_1 = arith.constant 0 : index
    %c0_2 = arith.constant 0 : index
    %1 = vector.load %arg2[%c0_1, %c0_2] : memref<32x64xf32, #tpu.memory_space<vmem>>, vector<32x64xf32>
    %cst = arith.constant dense<0.000000e+00> : vector<8x64xf32>
    %2 = tpu.matmul %0, %1, %cst {dimension_numbers = #tpu.dot_dimension_numbers<[1], [0], [0], [1], [0, 0, 1, 1], [], []>} : vector<8x32xf32>, vector<32x64xf32>, vector<8x64xf32> -> vector<8x64xf32>
    %c0_3 = arith.constant 0 : index
    %c0_4 = arith.constant 0 : index
    %3 = vector.load %arg3[%c0_3, %c0_4] : memref<1x64xf32, #tpu.memory_space<vmem>>, vector<1x64xf32>
    %4 = vector.broadcast %3 : vector<1x64xf32> to vector<8x64xf32>
    %5 = arith.addf %2, %4 : vector<8x64xf32>
    %cst_5 = arith.constant 0.000000e+00 : f32
    %6 = vector.broadcast %cst_5 : f32 to vector<8x64xf32>
    %7 = arith.maximumf %5, %6 : vector<8x64xf32>
    %c0_6 = arith.constant 0 : index
    %c0_7 = arith.constant 0 : index
    %8 = vector.load %arg4[%c0_6, %c0_7] : memref<64x32xf32, #tpu.memory_space<vmem>>, vector<64x32xf32>
    %cst_8 = arith.constant dense<0.000000e+00> : vector<8x32xf32>
    %9 = tpu.matmul %7, %8, %cst_8 {dimension_numbers = #tpu.dot_dimension_numbers<[1], [0], [0], [1], [0, 0, 1, 1], [], []>} : vector<8x64xf32>, vector<64x32xf32>, vector<8x32xf32> -> vector<8x32xf32>
    %c0_9 = arith.constant 0 : index
    %c0_10 = arith.constant 0 : index
    %10 = vector.load %arg5[%c0_9, %c0_10] : memref<1x32xf32, #tpu.memory_space<vmem>>, vector<1x32xf32>
    %11 = vector.broadcast %10 : vector<1x32xf32> to vector<8x32xf32>
    %12 = arith.addf %9, %11 : vector<8x32xf32>
    %cst_11 = arith.constant 0.000000e+00 : f32
    %13 = vector.broadcast %cst_11 : f32 to vector<8x32xf32>
    %14 = arith.maximumf %12, %13 : vector<8x32xf32>
    %c0_12 = arith.constant 0 : index
    %c0_13 = arith.constant 0 : index
    %15 = vector.load %arg6[%c0_12, %c0_13] : memref<8x32xf32, #tpu.memory_space<vmem>>, vector<8x32xf32>
    %cst_14 = arith.constant dense<0.000000e+00> : vector<8x8xf32>
    %16 = tpu.matmul %15, %14, %cst_14 {dimension_numbers = #tpu.dot_dimension_numbers<[1], [1], [0], [0], [0, 0, 1, 0], [], []>} : vector<8x32xf32>, vector<8x32xf32>, vector<8x8xf32> -> vector<8x8xf32>
    %c0_15 = arith.constant 0 : index
    %c0_16 = arith.constant 0 : index
    %17 = vector.load %arg7[%c0_15, %c0_16] : memref<8x1xf32, #tpu.memory_space<vmem>>, vector<8x1xf32>
    %18 = vector.broadcast %17 : vector<8x1xf32> to vector<8x8xf32>
    %19 = arith.addf %16, %18 : vector<8x8xf32>
    %cst_17 = arith.constant dense<0xFF800000> : vector<8xf32>
    %20 = vector.multi_reduction <maximumf>, %19, %cst_17 [0] : vector<8x8xf32> to vector<8xf32>
    %21 = vector.shape_cast %20 : vector<8xf32> to vector<1x8xf32>
    %22 = vector.broadcast %21 : vector<1x8xf32> to vector<8x8xf32>
    %23 = arith.subf %19, %22 : vector<8x8xf32>
    %24 = math.exp %23 : vector<8x8xf32>
    %cst_18 = arith.constant dense<0.000000e+00> : vector<8xf32>
    %25 = vector.multi_reduction <add>, %24, %cst_18 [0] : vector<8x8xf32> to vector<8xf32>
    %26 = vector.shape_cast %25 : vector<8xf32> to vector<1x8xf32>
    %27 = tpu.reciprocal %26 {approx = true} : vector<1x8xf32> -> vector<1x8xf32>
    %28 = arith.mulf %26, %27 : vector<1x8xf32>
    %cst_19 = arith.constant 2.000000e+00 : f32
    %29 = vector.broadcast %cst_19 : f32 to vector<1x8xf32>
    %30 = arith.subf %29, %28 : vector<1x8xf32>
    %31 = arith.mulf %27, %30 : vector<1x8xf32>
    %32 = vector.broadcast %31 : vector<1x8xf32> to vector<8x8xf32>
    %33 = arith.mulf %24, %32 : vector<8x8xf32>
    %c0_20 = arith.constant 0 : index
    %c0_21 = arith.constant 0 : index
    %34 = vector.load %arg8[%c0_20, %c0_21] : memref<8x8xf32, #tpu.memory_space<vmem>>, vector<8x8xf32>
    tpu.vector_store %arg8[%c0_20, %c0_21], %33 {strides = array<i32>} : memref<8x8xf32, #tpu.memory_space<vmem>>, vector<8x8xf32>,
    return
  }
  func.func @transform_0(%arg0: i32) -> (i32, i32) {
    %c0_i32 = arith.constant 0 : i32
    %c0_i32_0 = arith.constant 0 : i32
    return %arg0, %c0_i32 : i32, i32
  }
  func.func @transform_1(%arg0: i32) -> (i32, i32) {
    %c0_i32 = arith.constant 0 : i32
    %c0_i32_0 = arith.constant 0 : i32
    %c0_i32_1 = arith.constant 0 : i32
    return %c0_i32, %c0_i32_0 : i32, i32
  }
  func.func @transform_2(%arg0: i32) -> (i32, i32) {
    %c0_i32 = arith.constant 0 : i32
    %c0_i32_0 = arith.constant 0 : i32
    %c0_i32_1 = arith.constant 0 : i32
    return %c0_i32, %c0_i32_0 : i32, i32
  }
  func.func @transform_3(%arg0: i32) -> (i32, i32) {
    %c0_i32 = arith.constant 0 : i32
    %c0_i32_0 = arith.constant 0 : i32
    %c0_i32_1 = arith.constant 0 : i32
    return %c0_i32, %c0_i32_0 : i32, i32
  }
  func.func @transform_4(%arg0: i32) -> (i32, i32) {
    %c0_i32 = arith.constant 0 : i32
    %c0_i32_0 = arith.constant 0 : i32
    %c0_i32_1 = arith.constant 0 : i32
    return %c0_i32, %c0_i32_0 : i32, i32
  }
  func.func @transform_5(%arg0: i32) -> (i32, i32) {
    %c0_i32 = arith.constant 0 : i32
    %c0_i32_0 = arith.constant 0 : i32
    %c0_i32_1 = arith.constant 0 : i32
    return %c0_i32, %c0_i32_0 : i32, i32
  }
  func.func @transform_6(%arg0: i32) -> (i32, i32) {
    %c0_i32 = arith.constant 0 : i32
    %c0_i32_0 = arith.constant 0 : i32
    %c0_i32_1 = arith.constant 0 : i32
    return %c0_i32, %c0_i32_0 : i32, i32
  }
  func.func @transform_7(%arg0: i32) -> (i32, i32) {
    %c0_i32 = arith.constant 0 : i32
    %c0_i32_0 = arith.constant 0 : i32
    return %c0_i32, %arg0 : i32, i32
  }
}

</mosaic_0001>

<bundles_post_ra>
// kernel: tpu_custom_call.1
= control target key start
LH: loop header
LB: loop body
LE: loop exit
PB: predicated region body
PF: predicated region fallthrough
CT: control target
= control target key end

     0   :  { %v434_v3 = vmov 0.0|0.0   ;;  %vm435_vm0 = vmmov 0   ;;  %v436_v6 = vmov 0.0   ;;  %s551_s0 = inlined_call_operand.vmem [shape: f32[8,32], index: 0, kind: input, shape index: {}]   ;;  %s552_s1 = inlined_call_operand.vmem [shape: f32[32,64], index: 1, kind: input, shape index: {}]   ;;  %s553_s2 = inlined_call_operand.vmem [shape: f32[1,64], index: 2, kind: input, shape index: {}]   ;;  %s554_s3 = inlined_call_operand.vmem [shape: f32[64,32], index: 3, kind: input, shape index: {}]   ;;  %s555_s4 = inlined_call_operand.vmem [shape: f32[1,32], index: 4, kind: input, shape index: {}]   ;;  %s556_s5 = inlined_call_operand.vmem [shape: f32[8,32], index: 5, kind: input, shape index: {}]   ;;  %s557_s6 = inlined_call_operand.vmem [shape: f32[8,1], index: 6, kind: input, shape index: {}]   ;;  %s558_s7 = inlined_call_operand.hbm [shape: f32[8,8], index: 7, kind: output, shape index: {}]  }
   0x1   :  { %v28_v0 = vld [vmem:[%s552_s1] sm:$0xff]  ;;  %v29_v1 = vld [vmem:[%s552_s1 + $0x8] sm:$0xff]  ;;  %v30_v2 = vld [vmem:[%s552_s1 + $0x10] sm:$0xff]  ;;  %382 = vmatprep.subr.bf16.mxu0 %v434_v3  ;;  %355 = vmatprep.mubr.msk.f32.mxu0 %vm435_vm0, %v436_v6 }
   0x2   :  { %v383_v4 = vpack.c.bf16 %v29_v1, %v28_v0  ;;  %v31_v5 = vld [vmem:[%s552_s1 + $0x18] sm:$0xff]  ;;  %v114_v7 = vld [vmem:[%s554_s3] sm:$0xff]  ;;  %388 = vmatprep.subr.bf16.mxu1 %v434_v3  ;;  %v115_v8 = vld [vmem:[%s554_s3 + $0x8] sm:$0xff]  ;;  %374 = vmatprep.mubr.msk.f32.mxu1 %vm435_vm0, %v436_v6 }
   0x3   :  { %v116_v9 = vld [vmem:[%s554_s3 + $0x10] sm:$0xff]  ;;  %v117_v10 = vld [vmem:[%s554_s3 + $0x18] sm:$0xff]  ;;  %v386_v11 = vpack.c.bf16 %v31_v5, %v30_v2  ;;  %v389_v12 = vpack.c.bf16 %v115_v8, %v114_v7 }
   0x4   :  { %384 = vmatpush3.bf16.msra.mxu0 %v383_v4 }
   0x5   :  { %385 = vmatprep.subr.bf16.mxu0 %v434_v3 }
   0x6   :  { %12 = vsyncpa [#allocation3], 0  ;;  %390 = vmatpush3.bf16.msra.mxu1 %v389_v12  ;;  %v392_v13 = vpack.c.bf16 %v117_v10, %v116_v9  ;;  %v118_v14 = vld [vmem:[%s554_s3 + $0x20] sm:$0xff]  ;;  %v119_v15 = vld [vmem:[%s554_s3 + $0x28] sm:$0xff]  ;;  %vm39_vm1 = vcmask 261120   ;;  %vm129_vm2 = vcmask 523264  }
   0x7   :  { %391 = vmatprep.subr.bf16.mxu1 %v434_v3  ;;  %v27_v16 = vld [vmem:[%s551_s0] sm:$0xff]  ;;  %v395_v17 = vpack.c.bf16 %v119_v15, %v118_v14  ;;  %v120_v18 = vld [vmem:[%s554_s3 + $0x30] sm:$0xff]  ;;  %v121_v19 = vld [vmem:[%s554_s3 + $0x38] sm:$0xff]  ;;  %v437_v27 = vmov 0   ;;  %vm287_vm3 = vcmask 64512  }
   0x8   :  { %387 = vmatpush3.bf16.msra.mxu0 %v386_v11  ;;  %v398_v20 = vpack.c.bf16 %v121_v19, %v120_v18  ;;  %v325_v21 = vld [vmem:[%s553_s2] ss:$0 sm:$0xff]  ;;  %405 = vset.pattern.permute.xlu0 %v437_v27 }
   0x9   :  { %377 = vmatprep.subr.mxu0 %v436_v6  ;;  %v205_v26 = vld [vmem:[%s557_s6] sm:$0xff] }
   0xa   :  { %393 = vmatpush3.bf16.msra.mxu1 %v392_v13  ;;  %208 = vperm.xlu0 %405, %v205_v26   ;;  %v327_v28 = vld [vmem:[%s555_s4] ss:$0 sm:$0xff]  ;;  %s438_s4 = smov [#allocation2]  }
   0xb   :  { %356 = vmatmul.mubr.msk.f32.vlgmr.msra.gmra.mrb[0].mxu0 %vm39_vm1, %v27_v16  ;;  %394 = vmatprep.subr.bf16.mxu1 %v434_v3  ;;  %v204_v33 = vld [vmem:[%s556_s5] sm:$0xff]  ;;  %s317_s5 = sshll.u32 %s438_s4, 4  ;;  %s318_s5 = int_to_ptr.vmem [resolvable:$true] %s317_s5 }
   0xc   :  { %379 = vmatprep.mubr.msk.f32.mxu0 %vm435_vm0, %v436_v6  ;;  %s410_s6 = scalar_lea.vmem %s318_s5, 128  ;;  %p415_p1 = scmp.lt.s32.totalorder %s318_s5, %s318_s5 }
   0xd   :  { %p411_p0 = scmp.ne.s32.totalorder %s318_s5, %s410_s6  ;;  %p416_p2 = scmp.lt.s32.totalorder %s410_s6, %s410_s6 }
   0xe   :  { %396 = vmatpush3.bf16.msra.mxu1 %v395_v17 }
   0xf   :  { %397 = vmatprep.subr.bf16.mxu1 %v434_v3  ;;  %p417_p3 = por %p416_p2, %p415_p1 }
  0x11   :  { %p418_p4 = pnand %p417_p3, %p411_p0 }
  0x12   :  { %399 = vmatpush3.bf16.msra.mxu1 %v398_v20 }
  0x89   :  { %v209_v34 = vpop.permute.xlu0 %208 }
  0xde   :  { %v109_v22 = vpop.f32.mrb[0].mxu0 }
  0xdf   :  { %v110_v23 = vadd.f32 %v325_v21, %v109_v22  ;;  %v357_v24 = vpop.f32.mrb[1].mxu0 }
  0xe1   :  { %v113_v25 = vmax.f32 %v110_v23, 0.0 }
  0xe3   :  { %375 = vmatmul.mubr.msk.f32.vlgmr.msra.gmra.mrb[0].mxu1 %vm129_vm2, %v113_v25 }
 0x1b6   :  { %v199_v29 = vpop.f32.mrb[0].mxu1 }
 0x1b7   :  { %v200_v30 = vadd.f32 %v327_v28, %v199_v29  ;;  %v376_v31 = vpop.f32.mrb[1].mxu1 }
 0x1b9   :  { %v203_v32 = vmax.f32 %v200_v30, 0.0 }
 0x1bb   :  { %378 = vmatpush3.xpose.msk.msra.mxu0 %vm39_vm1, %v203_v32 }
 0x1be   :  { %380 = vmatmul.mubr.msk.f32.vlgmr.msra.gmra.mrb[2].mxu0 %vm39_vm1, %v204_v33 }
 0x291   :  { %v283_v35 = vpop.f32.mrb[2].mxu0 }
 0x292   :  { %v284_v36 = vadd.f32 %v283_v35, %v209_v34  ;;  %v381_v37 = vpop.f32.mrb[3].mxu0 }
 0x294   :  { %v288_v38 = vsel %vm287_vm3, %v284_v36, -inf }
 0x295   :  { %v289_v39 = vrot.slane %v288_v38, 4 }
 0x297   :  { %v290_v40 = vmax.f32 %v288_v38, %v289_v39 }
 0x299   :  { %v291_v41 = vrot.slane %v290_v40, 2 }
 0x29b   :  { %v292_v42 = vmax.f32 %v290_v40, %v291_v41 }
 0x29d   :  { %v293_v43 = vrot.slane %v292_v42, 1 }
 0x29f   :  { %v294_v44 = vmax.f32 %v292_v42, %v293_v43 }
 0x2a1   :  { %v295_v45 = vsub.f32 %v284_v36, %v294_v44 }
 0x2a3   :  { %v296_v46 = vmul.f32 1.442695, %v295_v45 }
 0x2a5   :  { %406 = vpow2.f32 %v296_v46 }
 0x2af   :  { %v407_v47 = vpop.eup %406 }
 0x2b0   :  { %v298_v48 = vsel %vm287_vm3, %v407_v47, 0.0 }
 0x2b1   :  { %v299_v49 = vrot.slane %v298_v48, 4 }
 0x2b3   :  { %v300_v50 = vadd.f32 %v299_v49, %v298_v48 }
 0x2b5   :  { %v301_v51 = vrot.slane %v300_v50, 2 }
 0x2b7   :  { %v302_v52 = vadd.f32 %v301_v51, %v300_v50 }
 0x2b9   :  { %v303_v53 = vrot.slane %v302_v52, 1 }
 0x2bb   :  { %v304_v54 = vadd.f32 %v303_v53, %v302_v52 }
 0x2bd   :  { %408 = vrcp.f32 %v304_v54 }
 0x2c7   :  { %v409_v55 = vpop.eup %408 }
 0x2c8   :  { %v306_v56 = vmul.f32 %v409_v55, %v304_v54 }
 0x2ca   :  { %v307_v57 = vsub.f32 2.0, %v306_v56 }
 0x2cc   :  { %v308_v58 = vmul.f32 %v409_v55, %v307_v57 }
 0x2ce   :  { %v309_v59 = vmul.f32 %v407_v47, %v308_v58 }
 0x2d0   :  { %310 = vst.msk [vmem:[#allocation2] sm:$0xff] %vm287_vm3, %v309_v59 }
 0x2d1   :  { %421 = shalt.err (!%p418_p4)
}
 0x2d2   :  { %s422_s10 = scalar_lea.hbm %s558_s7, 128 }
 0x2d3   :  { %p423_p5 = scmp.ne.s32.totalorder %s558_s7, %s422_s10  ;;  %p426_p6 = scmp.lt.u32.totalorder %s422_s10, %s558_s7 }
 0x2d5   :  { %p428_p7 = pnand %p426_p6, %p423_p5 }
 0x2d7   :  { %431 = shalt.err (!%p428_p7)
}
 0x2d8   :  { %320 = dma.vmem_to_hbm [thread:$0]  %s318_s5, 128, %s558_s7, [#allocation3]  }
 0x2d9   :  { %432 = dma.done.wait [#allocation3], 128  }
 0x2da   :  { %433 = vsyncadd [#allocation3], 4294967168 }
 0x2db   :  { %324 = vsyncpa [#allocation3], 1 }

</bundles_post_ra>
